<compile_context>
chip_gen: v5e
topology: v5e:2x2
jax: 0.10.0
libtpu: 0.0.40
codegen_flags: <defaults>
</compile_context>

<pallas_src>
import functools
from typing import NamedTuple, Tuple

import jax
import jax.numpy as jnp
from jax.experimental import pallas as pl
from jax.experimental.pallas import tpu as pltpu

_BN_EPS = 1e-5
_LANES = 128  # lane width used for all padded parameter / output buffers


class PackedParams(NamedTuple):
    wbuf: jax.Array                                # [R, 128] weights + biases
    layer_meta: Tuple[Tuple[int, int, int], ...]   # (fan_in, fan_out, row_off)
    bias_off: int                                  # first bias row in wbuf
    feat_dim: int                                  # F (layer-0 fan_in == 4F)


def pack_discriminator_params(params, feat_dim):
    """Pack ALL weights and biases into one zero-padded, lane-dense [R, 128]
    buffer.  Call ONCE per parameter set (hoisted off the per-forward path)."""
    assert params[0][0].shape[0] == 4 * feat_dim, "layer-0 fan_in must be 4*F"
    rows, layer_meta = [], []
    off = 0
    for idx, (w, b) in enumerate(params):
        fan_in, fan_out = w.shape
        assert fan_out <= _LANES, "layer width must be <= 128"
        if idx > 0:
            assert fan_in <= _LANES, "hidden fan-in must be <= 128"
        r = -(-fan_in // 8) * 8                    # keep row offsets 8-aligned
        wp = jnp.zeros((r, _LANES), jnp.float32).at[:fan_in, :fan_out].set(
            w.astype(jnp.float32))
        rows.append(wp)
        layer_meta.append((fan_in, fan_out, off))
        off += r
    bias_off = off
    for (w, b) in params:
        fan_out = w.shape[1]
        rows.append(jnp.zeros((1, _LANES), jnp.float32).at[:, :fan_out].set(
            jnp.reshape(b, (1, -1)).astype(jnp.float32)))
        off += 1
    pad = -off % 8                                 # tidy 8-row total
    if pad:
        rows.append(jnp.zeros((pad, _LANES), jnp.float32))
    wbuf = jax.block_until_ready(jnp.concatenate(rows, axis=0))
    return PackedParams(wbuf, tuple(layer_meta), bias_off, feat_dim)


def _discriminator_kernel(batch, layer_meta, bias_off,
                          f1_ref, f2_ref, w_ref, out_ref):
    """Fully fused forward pass for one (feat1, feat2) pair.

    f1_ref/f2_ref : [B, F]   raw features (2 small DMAs, no host-side stack)
    w_ref         : [R, 128] all weights + biases, zero-padded  (1 DMA)
    out_ref       : [B, 128] lane-dense sigmoid output; column 0 is the logit

    Zero-padding is self-consistent: padded weight columns yield activation
    columns of exactly 0, which BN (mean=var=0 -> 0) and Swish(0)=0 preserve;
    padded weight rows are never touched because the activation is sliced to
    its live lanes before each dot.
    """
    num_layers = len(layer_meta)
    inv_b = 1.0 / float(batch)  # NOTE: batch must be the true (unpadded) B

    f1 = f1_ref[...]
    f2 = f2_ref[...]
    # Layer-0 input [f1 | f2 | |f1-f2| | f1*f2]: lane-axis concat is a cheap
    # intra-vreg placement on the XLU, feeding ONE fused dot instead of four.
    ft = jnp.concatenate([f1, f2, jnp.abs(f1 - f2), f1 * f2], axis=1)  # [B,4F]

    def bn_swish(x):
        # Training-mode BatchNorm1d (gamma=1, beta=0), two-pass statistics.
        mean = jnp.sum(x, axis=0, keepdims=True) * inv_b
        xc = x - mean
        var = jnp.sum(xc * xc, axis=0, keepdims=True) * inv_b
        y = xc * jax.lax.rsqrt(var + _BN_EPS)
        return y * jax.nn.sigmoid(y)               # MemoryEfficientSwish

    for i, (fan_in, fan_out, off) in enumerate(layer_meta):
        if i > 0:
            ft = ft[:, :fan_in]                    # static live-lane slice
        w = w_ref[pl.ds(off, fan_in), :]           # [fan_in, 128] static slice
        ft = jnp.dot(ft, w, preferred_element_type=jnp.float32)     # [B, 128]
        ft = ft + w_ref[pl.ds(bias_off + i, 1), :]                   # bias row
        if i < num_layers - 1:
            ft = bn_swish(ft)

    out_ref[...] = jax.nn.sigmoid(ft)              # lane-dense full store


def discriminator_forward(feat1, feat2, packed):
    """Single (feat1, feat2) pair.  feat1/feat2: [B, F].  Returns [B, 1]."""
    B, F = feat1.shape
    assert F == packed.feat_dim
    vmem = pl.BlockSpec(memory_space=pltpu.MemorySpace.VMEM)
    kernel = functools.partial(_discriminator_kernel, B,
                               packed.layer_meta, packed.bias_off)
    out = pl.pallas_call(
        kernel,
        out_shape=jax.ShapeDtypeStruct((B, _LANES), jnp.float32),
        in_specs=[vmem, vmem, vmem],
        out_specs=vmem,
    )(feat1.astype(jnp.float32), feat2.astype(jnp.float32), packed.wbuf)
    return out[:, :1]                              # column 0 is the real output


def discriminator_forward_pairs(feat1, feat2, packed):
    """Batched pairs: feat1/feat2 are [P, B, F]; BatchNorm statistics stay
    independent per pair (each grid step sees only its own slab).  One gridded
    pallas_call with a 'parallel' pair axis (v7x: shards over both TCs)."""
    P, B, F = feat1.shape
    assert F == packed.feat_dim
    R = packed.wbuf.shape[0]
    kernel = functools.partial(_discriminator_kernel, B,
                               packed.layer_meta, packed.bias_off)
    feat_spec = pl.BlockSpec((None, B, F), lambda p: (p, 0, 0))
    out = pl.pallas_call(
        kernel,
        out_shape=jax.ShapeDtypeStruct((P, B, _LANES), jnp.float32),
        grid=(P,),
        in_specs=[feat_spec, feat_spec,
                  pl.BlockSpec((R, _LANES), lambda p: (0, 0))],
        out_specs=pl.BlockSpec((None, B, _LANES), lambda p: (p, 0, 0)),
        compiler_params=pltpu.CompilerParams(dimension_semantics=("parallel",)),
    )(feat1.astype(jnp.float32), feat2.astype(jnp.float32), packed.wbuf)
    return out[:, :, :1]


def init_linear(key, fan_in, fan_out):
    """Deterministic init matching torch.nn.Linear default bounds."""
    kw, kb = jax.random.split(key)
    bound = 1.0 / (fan_in ** 0.5)
    w = jax.random.uniform(kw, (fan_in, fan_out), jnp.float32, -bound, bound)
    b = jax.random.uniform(kb, (1, fan_out), jnp.float32, -bound, bound)
    return w, b


def reference_forward(feat1, feat2, params):
    """Plain-JAX reference mirroring the PyTorch forward (training-mode BN)."""
    ft = jnp.concatenate(
        [feat1, feat2, jnp.abs(feat1 - feat2), feat1 * feat2], axis=1)
    num_hidden = len(params) - 1
    for i in range(num_hidden):
        w, b = params[i]
        ft = ft @ w + b
        mean = jnp.mean(ft, axis=0, keepdims=True)
        var = jnp.mean((ft - mean) ** 2, axis=0, keepdims=True)
        ft = (ft - mean) / jnp.sqrt(var + _BN_EPS)
        ft = ft * jax.nn.sigmoid(ft)
    w, b = params[-1]
    return jax.nn.sigmoid(ft @ w + b)


if __name__ == "__main__":
    # Shapes consistent with the module: feat dim F = 8 -> input_dim = 4F = 32,
    # hidden_dim = [32, 16], output_dim = 1, batch B = 8.
    B, F = 8, 8
    input_dim = 4 * F
    hidden_dim = [32, 16]

    key = jax.random.PRNGKey(0)
    k1, k2, k3, kp = jax.random.split(key, 4)
    feat1 = jax.random.normal(k1, (B, F), jnp.float32)
    feat2 = jax.random.normal(k2, (B, F), jnp.float32)

    dims = [input_dim] + hidden_dim + [1]
    keys = jax.random.split(kp, len(dims) - 1)
    params = [init_linear(keys[i], dims[i], dims[i + 1])
              for i in range(len(dims) - 1)]

    # Parameter packing happens ONCE (off the per-call hot path) and is reused.
    packed = pack_discriminator_params(params, F)

    # --- single-pair forward ------------------------------------------------
    out = jax.block_until_ready(discriminator_forward(feat1, feat2, packed))
    ref = reference_forward(feat1, feat2, params)
    assert out.shape == (B, 1), out.shape
    assert jnp.allclose(out, ref, atol=1e-5, rtol=1e-5), (out, ref)

    # --- batched-pairs forward (one gridded call, 'parallel' pair axis) ------
    P = 2
    feat1b = jnp.stack([feat1, jax.random.normal(k3, (B, F), jnp.float32)])
    feat2b = jnp.stack([feat2, feat1])
    outb = jax.block_until_ready(
        discriminator_forward_pairs(feat1b, feat2b, packed))
    assert outb.shape == (P, B, 1), outb.shape
    for p in range(P):
        refp = reference_forward(feat1b[p], feat2b[p], params)
        assert jnp.allclose(outb[p], refp, atol=1e-5, rtol=1e-5)

    print("KERNEL_OK")
</pallas_src>

<mosaic_0001>
module attributes {stable_mosaic.version = 11 : i64} {
  func.func @_discriminator_kernel(%arg0: memref<8x8xf32, #tpu.memory_space<vmem>>, %arg1: memref<8x8xf32, #tpu.memory_space<vmem>>, %arg2: memref<88x128xf32, #tpu.memory_space<vmem>>, %arg3: memref<8x128xf32, #tpu.memory_space<vmem>>) attributes {dimension_semantics = [], scalar_prefetch = 0 : i64, scratch_operands = 0 : i64, tpu.core_type = #tpu.core_type<tc>} {
    %c0 = arith.constant 0 : index
    %c0_0 = arith.constant 0 : index
    %0 = vector.load %arg0[%c0, %c0_0] : memref<8x8xf32, #tpu.memory_space<vmem>>, vector<8x8xf32>
    %c0_1 = arith.constant 0 : index
    %c0_2 = arith.constant 0 : index
    %1 = vector.load %arg1[%c0_1, %c0_2] : memref<8x8xf32, #tpu.memory_space<vmem>>, vector<8x8xf32>
    %2 = arith.subf %0, %1 : vector<8x8xf32>
    %3 = math.absf %2 : vector<8x8xf32>
    %4 = arith.mulf %0, %1 : vector<8x8xf32>
    %5 = tpu.concatenate %0, %1, %3, %4 in 1 : vector<8x8xf32>, vector<8x8xf32>, vector<8x8xf32>, vector<8x8xf32> -> vector<8x32xf32>
    %c0_3 = arith.constant 0 : index
    %c0_4 = arith.constant 0 : index
    %6 = vector.load %arg2[%c0_3, %c0_4] : memref<88x128xf32, #tpu.memory_space<vmem>>, vector<32x128xf32>
    %cst = arith.constant dense<0.000000e+00> : vector<8x128xf32>
    %7 = tpu.matmul %5, %6, %cst {dimension_numbers = #tpu.dot_dimension_numbers<[1], [0], [0], [1], [0, 0, 1, 1], [], []>} : vector<8x32xf32>, vector<32x128xf32>, vector<8x128xf32> -> vector<8x128xf32>
    %c80 = arith.constant 80 : index
    %c0_5 = arith.constant 0 : index
    %8 = vector.load %arg2[%c80, %c0_5] : memref<88x128xf32, #tpu.memory_space<vmem>>, vector<1x128xf32>
    %9 = vector.broadcast %8 : vector<1x128xf32> to vector<8x128xf32>
    %10 = arith.addf %7, %9 : vector<8x128xf32>
    %cst_6 = arith.constant dense<0.000000e+00> : vector<128xf32>
    %11 = vector.multi_reduction <add>, %10, %cst_6 [0] : vector<8x128xf32> to vector<128xf32>
    %12 = vector.shape_cast %11 : vector<128xf32> to vector<1x128xf32>
    %cst_7 = arith.constant 1.250000e-01 : f32
    %13 = vector.broadcast %cst_7 : f32 to vector<1x128xf32>
    %14 = arith.mulf %12, %13 : vector<1x128xf32>
    %15 = vector.broadcast %14 : vector<1x128xf32> to vector<8x128xf32>
    %16 = arith.subf %10, %15 : vector<8x128xf32>
    %17 = arith.mulf %16, %16 : vector<8x128xf32>
    %cst_8 = arith.constant dense<0.000000e+00> : vector<128xf32>
    %18 = vector.multi_reduction <add>, %17, %cst_8 [0] : vector<8x128xf32> to vector<128xf32>
    %19 = vector.shape_cast %18 : vector<128xf32> to vector<1x128xf32>
    %cst_9 = arith.constant 1.250000e-01 : f32
    %20 = vector.broadcast %cst_9 : f32 to vector<1x128xf32>
    %21 = arith.mulf %19, %20 : vector<1x128xf32>
    %cst_10 = arith.constant 9.99999974E-6 : f32
    %22 = vector.broadcast %cst_10 : f32 to vector<1x128xf32>
    %23 = arith.addf %21, %22 : vector<1x128xf32>
    %24 = math.rsqrt %23 : vector<1x128xf32>
    %25 = vector.broadcast %24 : vector<1x128xf32> to vector<8x128xf32>
    %26 = arith.mulf %16, %25 : vector<8x128xf32>
    %27 = arith.negf %26 : vector<8x128xf32>
    %28 = math.exp %27 : vector<8x128xf32>
    %cst_11 = arith.constant 1.000000e+00 : f32
    %29 = vector.broadcast %cst_11 : f32 to vector<8x128xf32>
    %30 = arith.addf %29, %28 : vector<8x128xf32>
    %31 = arith.divf %29, %30 : vector<8x128xf32>
    %32 = arith.mulf %26, %31 : vector<8x128xf32>
    %33 = vector.extract_strided_slice %32 {offsets = [0, 0], sizes = [8, 32], strides = [1, 1]} : vector<8x128xf32> to vector<8x32xf32>
    %c32 = arith.constant 32 : index
    %c0_12 = arith.constant 0 : index
    %34 = vector.load %arg2[%c32, %c0_12] : memref<88x128xf32, #tpu.memory_space<vmem>>, vector<32x128xf32>
    %cst_13 = arith.constant dense<0.000000e+00> : vector<8x128xf32>
    %35 = tpu.matmul %33, %34, %cst_13 {dimension_numbers = #tpu.dot_dimension_numbers<[1], [0], [0], [1], [0, 0, 1, 1], [], []>} : vector<8x32xf32>, vector<32x128xf32>, vector<8x128xf32> -> vector<8x128xf32>
    %c81 = arith.constant 81 : index
    %c0_14 = arith.constant 0 : index
    %36 = vector.load %arg2[%c81, %c0_14] : memref<88x128xf32, #tpu.memory_space<vmem>>, vector<1x128xf32>
    %37 = vector.broadcast %36 : vector<1x128xf32> to vector<8x128xf32>
    %38 = arith.addf %35, %37 : vector<8x128xf32>
    %cst_15 = arith.constant dense<0.000000e+00> : vector<128xf32>
    %39 = vector.multi_reduction <add>, %38, %cst_15 [0] : vector<8x128xf32> to vector<128xf32>
    %40 = vector.shape_cast %39 : vector<128xf32> to vector<1x128xf32>
    %cst_16 = arith.constant 1.250000e-01 : f32
    %41 = vector.broadcast %cst_16 : f32 to vector<1x128xf32>
    %42 = arith.mulf %40, %41 : vector<1x128xf32>
    %43 = vector.broadcast %42 : vector<1x128xf32> to vector<8x128xf32>
    %44 = arith.subf %38, %43 : vector<8x128xf32>
    %45 = arith.mulf %44, %44 : vector<8x128xf32>
    %cst_17 = arith.constant dense<0.000000e+00> : vector<128xf32>
    %46 = vector.multi_reduction <add>, %45, %cst_17 [0] : vector<8x128xf32> to vector<128xf32>
    %47 = vector.shape_cast %46 : vector<128xf32> to vector<1x128xf32>
    %cst_18 = arith.constant 1.250000e-01 : f32
    %48 = vector.broadcast %cst_18 : f32 to vector<1x128xf32>
    %49 = arith.mulf %47, %48 : vector<1x128xf32>
    %cst_19 = arith.constant 9.99999974E-6 : f32
    %50 = vector.broadcast %cst_19 : f32 to vector<1x128xf32>
    %51 = arith.addf %49, %50 : vector<1x128xf32>
    %52 = math.rsqrt %51 : vector<1x128xf32>
    %53 = vector.broadcast %52 : vector<1x128xf32> to vector<8x128xf32>
    %54 = arith.mulf %44, %53 : vector<8x128xf32>
    %55 = arith.negf %54 : vector<8x128xf32>
    %56 = math.exp %55 : vector<8x128xf32>
    %cst_20 = arith.constant 1.000000e+00 : f32
    %57 = vector.broadcast %cst_20 : f32 to vector<8x128xf32>
    %58 = arith.addf %57, %56 : vector<8x128xf32>
    %59 = arith.divf %57, %58 : vector<8x128xf32>
    %60 = arith.mulf %54, %59 : vector<8x128xf32>
    %61 = vector.extract_strided_slice %60 {offsets = [0, 0], sizes = [8, 16], strides = [1, 1]} : vector<8x128xf32> to vector<8x16xf32>
    %c64 = arith.constant 64 : index
    %c0_21 = arith.constant 0 : index
    %62 = vector.load %arg2[%c64, %c0_21] : memref<88x128xf32, #tpu.memory_space<vmem>>, vector<16x128xf32>
    %cst_22 = arith.constant dense<0.000000e+00> : vector<8x128xf32>
    %63 = tpu.matmul %61, %62, %cst_22 {dimension_numbers = #tpu.dot_dimension_numbers<[1], [0], [0], [1], [0, 0, 1, 1], [], []>} : vector<8x16xf32>, vector<16x128xf32>, vector<8x128xf32> -> vector<8x128xf32>
    %c82 = arith.constant 82 : index
    %c0_23 = arith.constant 0 : index
    %64 = vector.load %arg2[%c82, %c0_23] : memref<88x128xf32, #tpu.memory_space<vmem>>, vector<1x128xf32>
    %65 = vector.broadcast %64 : vector<1x128xf32> to vector<8x128xf32>
    %66 = arith.addf %63, %65 : vector<8x128xf32>
    %67 = arith.negf %66 : vector<8x128xf32>
    %68 = math.exp %67 : vector<8x128xf32>
    %cst_24 = arith.constant 1.000000e+00 : f32
    %69 = vector.broadcast %cst_24 : f32 to vector<8x128xf32>
    %70 = arith.addf %69, %68 : vector<8x128xf32>
    %71 = arith.divf %69, %70 : vector<8x128xf32>
    %c0_25 = arith.constant 0 : index
    %c0_26 = arith.constant 0 : index
    %72 = vector.load %arg3[%c0_25, %c0_26] : memref<8x128xf32, #tpu.memory_space<vmem>>, vector<8x128xf32>
    tpu.vector_store %arg3[%c0_25, %c0_26], %71 {strides = array<i32>} : memref<8x128xf32, #tpu.memory_space<vmem>>, vector<8x128xf32>,
    return
  }
}

</mosaic_0001>

<bundles_post_ra>
// kernel: tpu_custom_call.1
= control target key start
LH: loop header
LB: loop body
LE: loop exit
PB: predicated region body
PF: predicated region fallthrough
CT: control target
= control target key end

     0   :  { %8 = vsyncpa [#allocation3], 0  ;;  %s480_s0 = inlined_call_operand.hbm [shape: f32[8,8], index: 0, kind: input, shape index: {}]   ;;  %s481_s1 = inlined_call_operand.hbm [shape: f32[8,8], index: 1, kind: input, shape index: {}]   ;;  %s482_s2 = inlined_call_operand.hbm [shape: f32[88,128], index: 2, kind: input, shape index: {}]   ;;  %s483_s3 = inlined_call_operand.hbm [shape: f32[8,128], index: 3, kind: output, shape index: {}]  }
   0x1   :  { %9 = vsyncpa [#allocation6], 0  ;;  %s27_s14 = sshll.u32 %s481_s1, 4  ;;  %s28_s14 = int_to_ptr.hbm [resolvable:$true] %s27_s14 }
   0x2   :  { %10 = vsyncpa [#allocation4], 0  ;;  %s436_s15 = smov [#allocation5]   ;;  %s16_s19 = sshll.u32 %s480_s0, 4  ;;  %s17_s19 = int_to_ptr.hbm [resolvable:$true] %s16_s19 }
   0x3   :  { %s29_s16 = sshll.u32 %s436_s15, 4  ;;  %s437_s20 = smov [#allocation2]   ;;  %s30_s16 = int_to_ptr.vmem [resolvable:$true] %s29_s16 }
   0x4   :  { %32 = dma.hbm_to_vmem [thread:$0]  %s28_s14, 128, %s30_s16, [#allocation6]  }
   0x5   :  { %s18_s21 = sshll.u32 %s437_s20, 4  ;;  %s37_s24 = sshll.u32 %s482_s2, 4  ;;  %s19_s21 = int_to_ptr.vmem [resolvable:$true] %s18_s21  ;;  %s38_s24 = int_to_ptr.hbm [resolvable:$true] %s37_s24 }
   0x6   :  { %21 = dma.hbm_to_vmem [thread:$0]  %s17_s19, 128, %s19_s21, [#allocation3]  }
   0x7   :  { %s438_s1 = smov [#allocation7]   ;;  %s439_s26 = smov 128  }
   0x8   :  { %s39_s25 = sshll.u32 %s438_s1, 4  ;;  %s440_s27 = smov 8   ;;  %s40_s25 = int_to_ptr.vmem [resolvable:$true] %s39_s25 }
   0x9   :  { %45 = dma.hbm_to_vmem [thread:$0]  %s38_s24, 1408, %s40_s25, [#allocation6], %s439_s26, %s439_s26, %s440_s27  }
   0xa   :  { %430 = dma.done.wait [#allocation3], 128  }
   0xb   :  { %431 = vsyncadd [#allocation3], 4294967168 }
   0xc   :  { %432 = dma.done.wait [#allocation6], 1536  }
   0xd   :  { %433 = vsyncadd [#allocation6], 4294965760  ;;  %v59_v0 = vld [vmem:[#allocation5] sm:$0xff]  ;;  %v58_v1 = vld [vmem:[#allocation2] sm:$0xff]  ;;  %s441_s0 = smov 24   ;;  %s442_s2 = smov 16  }
   0xe   :  { %64 = vrot.lane.b32.xlu0 %v59_v0, %s440_s27  ;;  %v60_v2 = vsub.f32 %v58_v1, %v59_v0  ;;  %v62_v3 = vmul.f32 %v59_v0, %v58_v1  ;;  %v84_v5 = vld [vmem:[#allocation7 + $0x18] sm:$0xff]  ;;  %v83_v6 = vld [vmem:[#allocation7 + $0x10] sm:$0xff]  ;;  %v82_v7 = vld [vmem:[#allocation7 + $0x8] sm:$0xff]  ;;  %vm75_vm0 = vcmask 64512   ;;  %vm77_vm1 = vcmask 130048   ;;  %s443_s28 = smov [#allocation8]  }
   0xf   :  { %103 = vmatpush.msra.mxu0 %v84_v5  ;;  %v81_v8 = vld [vmem:[#allocation7] sm:$0xff]  ;;  %vm79_vm2 = vcmask 195584   ;;  %vm87_vm3 = vcmask 261120   ;;  %v315_v15 = vld [vmem:[#allocation7 + $0x50] ss:$0 sm:$0xff]  ;;  %v162_v20 = vld [vmem:[#allocation7 + $0x38] sm:$0xff] }
  0x10   :  { %72 = vrot.lane.b32.xlu1 %v62_v3, %s441_s0  ;;  %v61_v4 = vand.u32 2147483647, %v60_v2  ;;  %v161_v21 = vld [vmem:[#allocation7 + $0x30] sm:$0xff]  ;;  %180 = vmatpush.msra.mxu1 %v162_v20  ;;  %v160_v23 = vld [vmem:[#allocation7 + $0x28] sm:$0xff]  ;;  %v159_v25 = vld [vmem:[#allocation7 + $0x20] sm:$0xff]  ;;  %s288_s29 = sshll.u32 %s443_s28, 4  ;;  %s289_s29 = int_to_ptr.vmem [resolvable:$true] %s288_s29 }
  0x11   :  { %104 = vmatpush.msra.mxu0 %v83_v6  ;;  %v316_v61 = vld [vmem:[#allocation7 + $0x51] ss:$0 sm:$0xff]  ;;  %v237_v2 = vld [vmem:[#allocation7 + $0x48] sm:$0xff]  ;;  %v236_v3 = vld [vmem:[#allocation7 + $0x40] sm:$0xff]  ;;  %s290_s5 = sshll.u32 %s483_s3, 4  ;;  %s291_s5 = int_to_ptr.hbm [resolvable:$true] %s290_s5 }
  0x12   :  { %181 = vmatpush.msra.mxu1 %v161_v21  ;;  %257 = vmatpush.msra.mxu2 %v237_v2 }
  0x13   :  { %105 = vmatpush.msra.mxu0 %v82_v7 }
  0x14   :  { %182 = vmatpush.msra.mxu1 %v160_v23  ;;  %258 = vmatpush.msra.mxu2 %v236_v3 }
  0x15   :  { %106 = vmatpush.msra.mxu0 %v81_v8 }
  0x16   :  { %68 = vrot.lane.b32.xlu0 %v61_v4, %s442_s2  ;;  %183 = vmatpush.msra.mxu1 %v159_v25 }
  0x80   :  { %v65_v9 = vpop.permute.xlu0 %64 }
  0x81   :  { %v76_v11 = vsel %vm75_vm0, %v58_v1, %v65_v9 }
  0x82   :  { %v73_v10 = vpop.permute.xlu1 %72 }
  0x88   :  { %v69_v12 = vpop.permute.xlu0 %68 }
  0x89   :  { %v78_v13 = vsel %vm77_vm1, %v76_v11, %v69_v12 }
  0x8a   :  { %v80_v14 = vsel %vm79_vm2, %v78_v13, %v73_v10 }
  0x8b   :  { %301 = vmatmul.msk.f32.vlgmr.msra.gmra.mxu0 %vm87_vm3, %v80_v14 }
 0x108   :  { %v108_v16 = vpop.f32.mrf.mxu0 }
 0x109   :  { %v109_v17 = vadd.f32 %v315_v15, %v108_v16 }
 0x10b   :  { %v111_v18 = vrot.slane %v109_v17, 4 }
 0x10d   :  { %v112_v19 = vadd.f32 %v111_v18, %v109_v17 }
 0x10f   :  { %v113_v22 = vrot.slane %v112_v19, 2 }
 0x111   :  { %v114_v24 = vadd.f32 %v113_v22, %v112_v19 }
 0x113   :  { %v115_v26 = vrot.slane %v114_v24, 1 }
 0x115   :  { %v116_v27 = vadd.f32 %v115_v26, %v114_v24 }
 0x117   :  { %v117_v28 = vmul.f32 0.125, %v116_v27 }
 0x119   :  { %v118_v29 = vsub.f32 %v109_v17, %v117_v28 }
 0x11b   :  { %v119_v30 = vmul.f32 %v118_v29, %v118_v29 }
 0x11d   :  { %v120_v31 = vrot.slane %v119_v30, 4 }
 0x11f   :  { %v121_v32 = vadd.f32 %v120_v31, %v119_v30 }
 0x121   :  { %v122_v33 = vrot.slane %v121_v32, 2 }
 0x123   :  { %v123_v34 = vadd.f32 %v122_v33, %v121_v32 }
 0x125   :  { %v124_v35 = vrot.slane %v123_v34, 1 }
 0x127   :  { %v125_v36 = vadd.f32 %v124_v35, %v123_v34 }
 0x129   :  { %v126_v37 = vmul.f32 0.125, %v125_v36 }
 0x12b   :  { %v127_v38 = vadd.f32 1e-05, %v126_v37 }
 0x12d   :  { %318 = vrsqrt.f32 %v127_v38  ;;  %vm134_vm5 = vweird.f32 %v127_v38 }
 0x133   :  { %v319_v39 = vpop.eup %318 }
 0x134   :  { %v129_v40 = vmul.f32 %v319_v39, %v127_v38  ;;  %vm135_vm4 = vweird.f32 %v319_v39 }
 0x135   :  { %vm136_vm6 = vmor %vm134_vm5, %vm135_vm4 }
 0x136   :  { %v130_v41 = vmul.f32 %v319_v39, %v129_v40 }
 0x138   :  { %v131_v42 = vmul.f32 0.5, %v130_v41  ;;  %v317_v41 = vld [vmem:[#allocation7 + $0x52] ss:$0 sm:$0xff] }
 0x13a   :  { %v132_v43 = vsub.f32 1.5, %v131_v42 }
 0x13c   :  { %v133_v44 = vmul.f32 %v319_v39, %v132_v43 }
 0x13e   :  { %v137_v45 = vsel %vm136_vm6, %v319_v39, %v133_v44 }
 0x13f   :  { %v138_v46 = vmul.f32 %v137_v45, %v118_v29 }
 0x141   :  { %v302_v47 = vmul.f32 -1.442695, %v138_v46 }
 0x143   :  { %320 = vpow2.f32 %v302_v47 }
 0x149   :  { %v321_v48 = vpop.eup %320 }
 0x14a   :  { %v142_v49 = vadd.f32 1.0, %v321_v48 }
 0x14c   :  { %322 = vrcp.f32 %v142_v49  ;;  %v154_v53 = vand.u32 2147483648, %v142_v49  ;;  %v152_v55 = vand.u32 2147483647, %v142_v49  ;;  %vm148_vm8 = vweird.f32 %v142_v49 }
 0x14e   :  { %v155_v57 = vor.u32 1.1754944e-38, %v154_v53  ;;  %vm153_vm10 = vcmp.eq.f32.partialorder %v152_v55, 8.507059e+37 }
 0x152   :  { %v323_v50 = vpop.eup %322 }
 0x153   :  { %v144_v51 = vmul.f32 %v323_v50, %v142_v49  ;;  %vm149_vm7 = vweird.f32 %v323_v50 }
 0x154   :  { %vm150_vm9 = vmor %vm148_vm8, %vm149_vm7 }
 0x155   :  { %v145_v52 = vsub.f32 1.0, %v144_v51 }
 0x157   :  { %v146_v54 = vmul.f32 %v323_v50, %v145_v52 }
 0x159   :  { %v147_v56 = vadd.f32 %v323_v50, %v146_v54 }
 0x15b   :  { %v151_v58 = vsel %vm150_vm9, %v323_v50, %v147_v56 }
 0x15c   :  { %v156_v59 = vsel %vm153_vm10, %v155_v57, %v151_v58 }
 0x15d   :  { %v158_v60 = vmul.f32 %v156_v59, %v138_v46 }
 0x15f   :  { %303 = vmatmul.msk.f32.vlgmr.msra.gmra.mxu1 %vm87_vm3, %v158_v60 }
 0x1dc   :  { %v185_v62 = vpop.f32.mrf.mxu1 }
 0x1dd   :  { %v186_v63 = vadd.f32 %v316_v61, %v185_v62 }
 0x1df   :  { %v188_v0 = vrot.slane %v186_v63, 4 }
 0x1e1   :  { %v189_v1 = vadd.f32 %v188_v0, %v186_v63 }
 0x1e3   :  { %v190_v4 = vrot.slane %v189_v1, 2 }
 0x1e5   :  { %v191_v5 = vadd.f32 %v190_v4, %v189_v1 }
 0x1e7   :  { %v192_v6 = vrot.slane %v191_v5, 1 }
 0x1e9   :  { %v193_v7 = vadd.f32 %v192_v6, %v191_v5 }
 0x1eb   :  { %v194_v8 = vmul.f32 0.125, %v193_v7 }
 0x1ed   :  { %v195_v9 = vsub.f32 %v186_v63, %v194_v8 }
 0x1ef   :  { %v196_v10 = vmul.f32 %v195_v9, %v195_v9 }
 0x1f1   :  { %v197_v11 = vrot.slane %v196_v10, 4 }
 0x1f3   :  { %v198_v12 = vadd.f32 %v197_v11, %v196_v10 }
 0x1f5   :  { %v199_v13 = vrot.slane %v198_v12, 2 }
 0x1f7   :  { %v200_v14 = vadd.f32 %v199_v13, %v198_v12 }
 0x1f9   :  { %v201_v15 = vrot.slane %v200_v14, 1 }
 0x1fb   :  { %v202_v16 = vadd.f32 %v201_v15, %v200_v14 }
 0x1fd   :  { %v203_v17 = vmul.f32 0.125, %v202_v16 }
 0x1ff   :  { %v204_v18 = vadd.f32 1e-05, %v203_v17 }
 0x201   :  { %324 = vrsqrt.f32 %v204_v18  ;;  %vm211_vm12 = vweird.f32 %v204_v18 }
 0x207   :  { %v325_v19 = vpop.eup %324 }
 0x208   :  { %v206_v20 = vmul.f32 %v325_v19, %v204_v18  ;;  %vm212_vm11 = vweird.f32 %v325_v19 }
 0x209   :  { %vm213_vm13 = vmor %vm211_vm12, %vm212_vm11 }
 0x20a   :  { %v207_v21 = vmul.f32 %v325_v19, %v206_v20 }
 0x20c   :  { %v208_v22 = vmul.f32 0.5, %v207_v21 }
 0x20e   :  { %v209_v23 = vsub.f32 1.5, %v208_v22 }
 0x210   :  { %v210_v24 = vmul.f32 %v325_v19, %v209_v23 }
 0x212   :  { %v214_v25 = vsel %vm213_vm13, %v325_v19, %v210_v24 }
 0x213   :  { %v215_v26 = vmul.f32 %v214_v25, %v195_v9 }
 0x215   :  { %v304_v27 = vmul.f32 -1.442695, %v215_v26 }
 0x217   :  { %326 = vpow2.f32 %v304_v27 }
 0x21d   :  { %v327_v28 = vpop.eup %326 }
 0x21e   :  { %v219_v29 = vadd.f32 1.0, %v327_v28 }
 0x220   :  { %328 = vrcp.f32 %v219_v29  ;;  %v231_v33 = vand.u32 2147483648, %v219_v29  ;;  %v229_v35 = vand.u32 2147483647, %v219_v29  ;;  %vm225_vm15 = vweird.f32 %v219_v29 }
 0x222   :  { %v232_v37 = vor.u32 1.1754944e-38, %v231_v33  ;;  %vm230_vm2 = vcmp.eq.f32.partialorder %v229_v35, 8.507059e+37 }
 0x226   :  { %v329_v30 = vpop.eup %328 }
 0x227   :  { %v221_v31 = vmul.f32 %v329_v30, %v219_v29  ;;  %vm226_vm14 = vweird.f32 %v329_v30 }
 0x228   :  { %vm227_vm0 = vmor %vm225_vm15, %vm226_vm14 }
 0x229   :  { %v222_v32 = vsub.f32 1.0, %v221_v31 }
 0x22b   :  { %v223_v34 = vmul.f32 %v329_v30, %v222_v32 }
 0x22d   :  { %v224_v36 = vadd.f32 %v329_v30, %v223_v34 }
 0x22f   :  { %v228_v38 = vsel %vm227_vm0, %v329_v30, %v224_v36 }
 0x230   :  { %v233_v39 = vsel %vm230_vm2, %v232_v37, %v228_v38 }
 0x231   :  { %v235_v40 = vmul.f32 %v233_v39, %v215_v26 }
 0x233   :  { %305 = vmatmul.msk.f32.vlgmr.msra.gmra.mxu2 %vm77_vm1, %v235_v40 }
 0x2b6   :  { %v260_v42 = vpop.f32.mrf.mxu2 }
 0x2b7   :  { %v261_v43 = vadd.f32 %v317_v41, %v260_v42 }
 0x2b9   :  { %v306_v44 = vmul.f32 -1.442695, %v261_v43 }
 0x2bb   :  { %330 = vpow2.f32 %v306_v44 }
 0x2c1   :  { %v331_v45 = vpop.eup %330 }
 0x2c2   :  { %v266_v46 = vadd.f32 1.0, %v331_v45 }
 0x2c4   :  { %332 = vrcp.f32 %v266_v46  ;;  %v278_v50 = vand.u32 2147483648, %v266_v46  ;;  %v276_v52 = vand.u32 2147483647, %v266_v46  ;;  %vm272_vm1 = vweird.f32 %v266_v46 }
 0x2c6   :  { %v279_v54 = vor.u32 1.1754944e-38, %v278_v50  ;;  %vm277_vm5 = vcmp.eq.f32.partialorder %v276_v52, 8.507059e+37 }
 0x2ca   :  { %v333_v47 = vpop.eup %332 }
 0x2cb   :  { %v268_v48 = vmul.f32 %v333_v47, %v266_v46  ;;  %vm273_vm3 = vweird.f32 %v333_v47 }
 0x2cc   :  { %vm274_vm4 = vmor %vm272_vm1, %vm273_vm3 }
 0x2cd   :  { %v269_v49 = vsub.f32 1.0, %v268_v48 }
 0x2cf   :  { %v270_v51 = vmul.f32 %v333_v47, %v269_v49 }
 0x2d1   :  { %v271_v53 = vadd.f32 %v333_v47, %v270_v51 }
 0x2d3   :  { %v275_v55 = vsel %vm274_vm4, %v333_v47, %v271_v53 }
 0x2d4   :  { %v280_v56 = vsel %vm277_vm5, %v279_v54, %v275_v55 }
 0x2d5   :  { %282 = vst [vmem:[#allocation8] sm:$0xff] %v280_v56 }
 0x2d6   :  { %293 = dma.vmem_to_hbm [thread:$0]  %s289_s29, 128, %s291_s5, [#allocation4]  }
 0x2d7   :  { %434 = dma.done.wait [#allocation4], 128  }
 0x2d8   :  { %435 = vsyncadd [#allocation4], 4294967168 }
 0x2d9   :  { %298 = vsyncpa [#allocation3], 1 }
 0x2da   :  { %299 = vsyncpa [#allocation6], 1 }
 0x2db   :  { %300 = vsyncpa [#allocation4], 1 }

</bundles_post_ra>
